<compile_context>
chip_gen: v7x
topology: tpu7x:2x2x1
jax: 0.10.0
libtpu: 0.0.40
codegen_flags: <defaults>
</compile_context>

<pallas_src>
import functools

import jax
import jax.numpy as jnp
import numpy as np
from jax.experimental import pallas as pl
from jax.experimental.pallas import tpu as pltpu


def _round_up(a, m):
    return ((a + m - 1) // m) * m


def ladder_kernel(
    xm_ref, eps_ref,
    w_inf_ref, b_inf_ref,
    w_mu_ref, b_mu_ref,
    w_ls_ref, b_ls_ref,
    w_dec_ref, b_dec_ref,
    w_post_ref, b_post_ref,
    o_ref, mu_ref, sigma_ref, z_ref,
):
    wdt = w_inf_ref.dtype   # matmul operand dtype (f32 or bf16); accumulation is f32

    # ---- inf_pre(inf_data_in.mean(-1)) : Linear(C->H) + tanh ----
    xm = xm_ref[...]                                                   # (TB, C) f32
    h = jnp.tanh(
        jnp.dot(xm.astype(wdt), w_inf_ref[...],
                preferred_element_type=jnp.float32) + b_inf_ref[...]
    )                                                                  # (TB, H) f32

    # ---- latent_q(q_data): separate loc / scale heads (no lane-offset slice) ----
    hw = h.astype(wdt)
    mu = (jnp.dot(hw, w_mu_ref[...],
                  preferred_element_type=jnp.float32) + b_mu_ref[...])      # (TB, Z)
    sigma = jnp.exp(
        jnp.dot(hw, w_ls_ref[...],
                preferred_element_type=jnp.float32) + b_ls_ref[...])        # (TB, Z)

    # ---- rsample: mu + sigma * eps  (latent_p is Normal(0,1); p_data is None) ----
    z = mu + sigma * eps_ref[...]                                           # (TB, Z)

    # ---- latent_dec: Linear(Z->H) + tanh ----
    d = jnp.tanh(
        jnp.dot(z.astype(wdt), w_dec_ref[...],
                preferred_element_type=jnp.float32) + b_dec_ref[...]
    )                                                                       # (TB, H)

    # ---- gen_post(bypass=None, latent_dec): Linear(H->C) ----
    o = (jnp.dot(d.astype(wdt), w_post_ref[...],
                 preferred_element_type=jnp.float32) + b_post_ref[...])     # (TB, C)

    # Four separate lane-contiguous stores (no in-kernel concat / lane rotates).
    o_ref[...] = o.astype(o_ref.dtype)
    mu_ref[...] = mu.astype(mu_ref.dtype)
    sigma_ref[...] = sigma.astype(sigma_ref.dtype)
    z_ref[...] = z.astype(z_ref.dtype)


def prepare_params(params, weight_dtype=jnp.float32):
    """One-time parameter preparation (hoisted out of the per-call forward).

    Casts weight matrices to `weight_dtype` (use jnp.bfloat16 on v6e/v7x to
    halve weight HBM/VMEM traffic; the kernel keeps f32 accumulation and f32
    tanh/exp/rsample).  Biases stay f32.
    """
    prep = {}
    for k, v in params.items():
        prep[k] = v.astype(weight_dtype if k.startswith("w_") else jnp.float32)
    return prep


def ladder_layer_forward(x, eps, params, *, block_b=None):
    """x: (B, C, T) f32, eps: (B, Z) f32, params from prepare_params().

    Returns (output_data (B, C, T), latent_q loc, latent_q scale, latent_q_sample).
    """
    B, C, T = x.shape
    Z = eps.shape[1]
    H = params["w_inf"].shape[1]

    # Time reduction outside the kernel: the kernel only touches B*C values.
    xm = jnp.mean(x, axis=-1).astype(jnp.float32)                      # (B, C)

    # ---- batch tiling: >=4 grid steps when possible, tiles up to 2048 rows ----
    B8 = _round_up(B, 8)
    if block_b is not None:
        tb = _round_up(block_b, 8)
    else:
        tb = min(2048, max(8, _round_up(pl.cdiv(B8, 4), 8)))
    B_pad = _round_up(B, tb)     # pad -> no ragged block, no OOB rows in exp/tanh
    grid = (B_pad // tb,)

    eps_f = eps.astype(jnp.float32)
    if B_pad != B:
        xm = jnp.pad(xm, ((0, B_pad - B), (0, 0)))
        eps_f = jnp.pad(eps_f, ((0, B_pad - B), (0, 0)))

    # ---- explicit VMEM budget (v5e default scoped limit is only 16 MiB) ----
    wbytes = jnp.dtype(params["w_inf"].dtype).itemsize
    w_elems = C * H + 2 * H * Z + Z * H + H * C
    b_elems = H + 2 * Z + H + C
    vmem_bytes = (
        2 * tb * (C + Z) * 4              # double-buffered input blocks (xm, eps)
        + 2 * tb * (C + 3 * Z) * 4        # double-buffered output blocks
        + 2 * (w_elems * wbytes + b_elems * 4)   # weights/biases (assume 2x buffered)
    )
    vmem_limit = int(min(64 * 1024 * 1024, 2 * vmem_bytes + 8 * 1024 * 1024))

    row = lambda d: pl.BlockSpec((tb, d), lambda i: (i, 0))            # batch-tiled
    full = lambda a: pl.BlockSpec(a.shape, lambda i: (0,) * a.ndim)    # VMEM-resident

    in_specs = [
        row(C),                           # xm
        row(Z),                           # eps
        full(params["w_inf"]), full(params["b_inf"]),
        full(params["w_mu"]), full(params["b_mu"]),
        full(params["w_ls"]), full(params["b_ls"]),
        full(params["w_dec"]), full(params["b_dec"]),
        full(params["w_post"]), full(params["b_post"]),
    ]
    out_specs = (row(C), row(Z), row(Z), row(Z))
    out_shape = (
        jax.ShapeDtypeStruct((B_pad, C), jnp.float32),
        jax.ShapeDtypeStruct((B_pad, Z), jnp.float32),
        jax.ShapeDtypeStruct((B_pad, Z), jnp.float32),
        jax.ShapeDtypeStruct((B_pad, Z), jnp.float32),
    )

    o_p, mu_p, sigma_p, z_p = pl.pallas_call(
        ladder_kernel,
        out_shape=out_shape,
        grid=grid,
        in_specs=in_specs,
        out_specs=out_specs,
        compiler_params=pltpu.CompilerParams(
            dimension_semantics=("parallel",),
            vmem_limit_bytes=vmem_limit,
        ),
    )(
        xm, eps_f,
        params["w_inf"], params["b_inf"],
        params["w_mu"], params["b_mu"],
        params["w_ls"], params["b_ls"],
        params["w_dec"], params["b_dec"],
        params["w_post"], params["b_post"],
    )

    o = o_p[:B]
    mu = mu_p[:B]
    sigma = sigma_p[:B]
    z = z_p[:B]

    # output_data[..., None].repeat(1, 1, T) — done in the wrapper (fuses for free).
    out = jnp.broadcast_to(o[:, :, None], (B, C, T))
    return out, mu, sigma, z


def ref_forward(x, eps, p):
    """Pure-JAX reference of the same forward semantics (for verification)."""
    xm = jnp.mean(x, axis=-1)
    h = jnp.tanh(xm @ p["w_inf"] + p["b_inf"])
    mu = h @ p["w_mu"] + p["b_mu"]
    sigma = jnp.exp(h @ p["w_ls"] + p["b_ls"])
    z = mu + sigma * eps
    d = jnp.tanh(z @ p["w_dec"] + p["b_dec"])
    o = d @ p["w_post"] + p["b_post"]
    out = jnp.broadcast_to(o[:, :, None], x.shape)
    return out, mu, sigma, z


if __name__ == "__main__":
    B, C, T, H, Z = 2, 4, 16, 32, 8

    key = jax.random.PRNGKey(0)
    keys = jax.random.split(key, 14)

    def init_w(k, shape, scale=0.1):
        return (scale * jax.random.normal(k, shape)).astype(jnp.float32)

    params = {
        "w_inf":  init_w(keys[0], (C, H)),
        "b_inf":  init_w(keys[1], (1, H)),
        "w_mu":   init_w(keys[2], (H, Z)),
        "b_mu":   init_w(keys[3], (1, Z)),
        "w_ls":   init_w(keys[4], (H, Z)),
        "b_ls":   init_w(keys[5], (1, Z)),
        "w_dec":  init_w(keys[6], (Z, H)),
        "b_dec":  init_w(keys[7], (1, H)),
        "w_post": init_w(keys[8], (H, C)),
        "b_post": init_w(keys[9], (1, C)),
    }

    fwd = jax.jit(lambda x_, e_, p_: ladder_layer_forward(x_, e_, p_))

    # --- check 1: module-spec small shapes (B=2), f32 weights, tight tolerance ---
    x = jax.random.normal(keys[10], (B, C, T), dtype=jnp.float32)
    eps = jax.random.normal(keys[11], (B, Z), dtype=jnp.float32)
    p_f32 = prepare_params(params, jnp.float32)

    out, mu, sigma, z = jax.block_until_ready(fwd(x, eps, p_f32))
    ro, rmu, rsigma, rz = ref_forward(x, eps, params)
    assert out.shape == (B, C, T) and mu.shape == (B, Z)
    np.testing.assert_allclose(np.asarray(out), np.asarray(ro), rtol=1e-5, atol=1e-5)
    np.testing.assert_allclose(np.asarray(mu), np.asarray(rmu), rtol=1e-5, atol=1e-5)
    np.testing.assert_allclose(np.asarray(sigma), np.asarray(rsigma), rtol=1e-5, atol=1e-5)
    np.testing.assert_allclose(np.asarray(z), np.asarray(rz), rtol=1e-5, atol=1e-5)

    # --- check 2: larger, non-8-aligned batch -> padding + multi-step grid
    #              (>=4 steps: pipelining + megacore sharding on v7x), f32 ---
    B2 = 100
    x2 = jax.random.normal(keys[12], (B2, C, T), dtype=jnp.float32)
    eps2 = jax.random.normal(keys[13], (B2, Z), dtype=jnp.float32)

    out2, mu2, sigma2, z2 = jax.block_until_ready(fwd(x2, eps2, p_f32))
    ro2, rmu2, rsigma2, rz2 = ref_forward(x2, eps2, params)
    assert out2.shape == (B2, C, T) and z2.shape == (B2, Z)
    np.testing.assert_allclose(np.asarray(out2), np.asarray(ro2), rtol=1e-5, atol=1e-5)
    np.testing.assert_allclose(np.asarray(mu2), np.asarray(rmu2), rtol=1e-5, atol=1e-5)
    np.testing.assert_allclose(np.asarray(sigma2), np.asarray(rsigma2), rtol=1e-5, atol=1e-5)
    np.testing.assert_allclose(np.asarray(z2), np.asarray(rz2), rtol=1e-5, atol=1e-5)

    # --- check 3: bf16 weight path (recommended for v6e/v7x), f32 accumulation;
    #              looser tolerance by construction ---
    p_bf16 = prepare_params(params, jnp.bfloat16)
    out3, mu3, sigma3, z3 = jax.block_until_ready(fwd(x2, eps2, p_bf16))
    np.testing.assert_allclose(np.asarray(out3), np.asarray(ro2), rtol=5e-2, atol=5e-2)
    np.testing.assert_allclose(np.asarray(z3), np.asarray(rz2), rtol=5e-2, atol=5e-2)

    print("KERNEL_OK")
</pallas_src>

<mosaic_0001>
module attributes {stable_mosaic.version = 11 : i64} {
  func.func @ladder_kernel(%arg0: i32, %arg1: memref<8x4xf32, #tpu.memory_space<vmem>>, %arg2: memref<8x8xf32, #tpu.memory_space<vmem>>, %arg3: memref<4x32xf32, #tpu.memory_space<vmem>>, %arg4: memref<1x32xf32, #tpu.memory_space<vmem>>, %arg5: memref<32x8xf32, #tpu.memory_space<vmem>>, %arg6: memref<1x8xf32, #tpu.memory_space<vmem>>, %arg7: memref<32x8xf32, #tpu.memory_space<vmem>>, %arg8: memref<1x8xf32, #tpu.memory_space<vmem>>, %arg9: memref<8x32xf32, #tpu.memory_space<vmem>>, %arg10: memref<1x32xf32, #tpu.memory_space<vmem>>, %arg11: memref<32x4xf32, #tpu.memory_space<vmem>>, %arg12: memref<1x4xf32, #tpu.memory_space<vmem>>, %arg13: memref<8x4xf32, #tpu.memory_space<vmem>>, %arg14: memref<8x8xf32, #tpu.memory_space<vmem>>, %arg15: memref<8x8xf32, #tpu.memory_space<vmem>>, %arg16: memref<8x8xf32, #tpu.memory_space<vmem>>) attributes {dimension_semantics = [#tpu.dimension_semantics<parallel>], iteration_bounds = array<i64: 1>, scalar_prefetch = 0 : i64, scratch_operands = 0 : i64, tpu.core_type = #tpu.core_type<tc>, window_params = [{transform_indices = @transform_0, window_bounds = array<i64: 8, 4>}, {transform_indices = @transform_1, window_bounds = array<i64: 8, 8>}, {pipeline_mode = #tpu.pipeline_mode<synchronous>, transform_indices = @transform_2, window_bounds = array<i64: 4, 32>}, {pipeline_mode = #tpu.pipeline_mode<synchronous>, transform_indices = @transform_3, window_bounds = array<i64: 1, 32>}, {pipeline_mode = #tpu.pipeline_mode<synchronous>, transform_indices = @transform_4, window_bounds = array<i64: 32, 8>}, {pipeline_mode = #tpu.pipeline_mode<synchronous>, transform_indices = @transform_5, window_bounds = array<i64: 1, 8>}, {pipeline_mode = #tpu.pipeline_mode<synchronous>, transform_indices = @transform_6, window_bounds = array<i64: 32, 8>}, {pipeline_mode = #tpu.pipeline_mode<synchronous>, transform_indices = @transform_7, window_bounds = array<i64: 1, 8>}, {pipeline_mode = #tpu.pipeline_mode<synchronous>, transform_indices = @transform_8, window_bounds = array<i64: 8, 32>}, {pipeline_mode = #tpu.pipeline_mode<synchronous>, transform_indices = @transform_9, window_bounds = array<i64: 1, 32>}, {pipeline_mode = #tpu.pipeline_mode<synchronous>, transform_indices = @transform_10, window_bounds = array<i64: 32, 4>}, {pipeline_mode = #tpu.pipeline_mode<synchronous>, transform_indices = @transform_11, window_bounds = array<i64: 1, 4>}, {transform_indices = @transform_12, window_bounds = array<i64: 8, 4>}, {transform_indices = @transform_13, window_bounds = array<i64: 8, 8>}, {transform_indices = @transform_14, window_bounds = array<i64: 8, 8>}, {transform_indices = @transform_15, window_bounds = array<i64: 8, 8>}]} {
    %c0 = arith.constant 0 : index
    %c0_0 = arith.constant 0 : index
    %0 = vector.load %arg1[%c0, %c0_0] : memref<8x4xf32, #tpu.memory_space<vmem>>, vector<8x4xf32>
    %c0_1 = arith.constant 0 : index
    %c0_2 = arith.constant 0 : index
    %1 = vector.load %arg3[%c0_1, %c0_2] : memref<4x32xf32, #tpu.memory_space<vmem>>, vector<4x32xf32>
    %cst = arith.constant dense<0.000000e+00> : vector<8x32xf32>
    %2 = tpu.matmul %0, %1, %cst {dimension_numbers = #tpu.dot_dimension_numbers<[1], [0], [0], [1], [0, 0, 1, 1], [], []>} : vector<8x4xf32>, vector<4x32xf32>, vector<8x32xf32> -> vector<8x32xf32>
    %c0_3 = arith.constant 0 : index
    %c0_4 = arith.constant 0 : index
    %3 = vector.load %arg4[%c0_3, %c0_4] : memref<1x32xf32, #tpu.memory_space<vmem>>, vector<1x32xf32>
    %4 = vector.broadcast %3 : vector<1x32xf32> to vector<8x32xf32>
    %5 = arith.addf %2, %4 : vector<8x32xf32>
    %6 = math.tanh %5 : vector<8x32xf32>
    %c0_5 = arith.constant 0 : index
    %c0_6 = arith.constant 0 : index
    %7 = vector.load %arg5[%c0_5, %c0_6] : memref<32x8xf32, #tpu.memory_space<vmem>>, vector<32x8xf32>
    %cst_7 = arith.constant dense<0.000000e+00> : vector<8x8xf32>
    %8 = tpu.matmul %6, %7, %cst_7 {dimension_numbers = #tpu.dot_dimension_numbers<[1], [0], [0], [1], [0, 0, 1, 1], [], []>} : vector<8x32xf32>, vector<32x8xf32>, vector<8x8xf32> -> vector<8x8xf32>
    %c0_8 = arith.constant 0 : index
    %c0_9 = arith.constant 0 : index
    %9 = vector.load %arg6[%c0_8, %c0_9] : memref<1x8xf32, #tpu.memory_space<vmem>>, vector<1x8xf32>
    %10 = vector.broadcast %9 : vector<1x8xf32> to vector<8x8xf32>
    %11 = arith.addf %8, %10 : vector<8x8xf32>
    %c0_10 = arith.constant 0 : index
    %c0_11 = arith.constant 0 : index
    %12 = vector.load %arg7[%c0_10, %c0_11] : memref<32x8xf32, #tpu.memory_space<vmem>>, vector<32x8xf32>
    %cst_12 = arith.constant dense<0.000000e+00> : vector<8x8xf32>
    %13 = tpu.matmul %6, %12, %cst_12 {dimension_numbers = #tpu.dot_dimension_numbers<[1], [0], [0], [1], [0, 0, 1, 1], [], []>} : vector<8x32xf32>, vector<32x8xf32>, vector<8x8xf32> -> vector<8x8xf32>
    %c0_13 = arith.constant 0 : index
    %c0_14 = arith.constant 0 : index
    %14 = vector.load %arg8[%c0_13, %c0_14] : memref<1x8xf32, #tpu.memory_space<vmem>>, vector<1x8xf32>
    %15 = vector.broadcast %14 : vector<1x8xf32> to vector<8x8xf32>
    %16 = arith.addf %13, %15 : vector<8x8xf32>
    %17 = math.exp %16 : vector<8x8xf32>
    %c0_15 = arith.constant 0 : index
    %c0_16 = arith.constant 0 : index
    %18 = vector.load %arg2[%c0_15, %c0_16] : memref<8x8xf32, #tpu.memory_space<vmem>>, vector<8x8xf32>
    %19 = arith.mulf %17, %18 : vector<8x8xf32>
    %20 = arith.addf %11, %19 : vector<8x8xf32>
    %c0_17 = arith.constant 0 : index
    %c0_18 = arith.constant 0 : index
    %21 = vector.load %arg9[%c0_17, %c0_18] : memref<8x32xf32, #tpu.memory_space<vmem>>, vector<8x32xf32>
    %cst_19 = arith.constant dense<0.000000e+00> : vector<8x32xf32>
    %22 = tpu.matmul %20, %21, %cst_19 {dimension_numbers = #tpu.dot_dimension_numbers<[1], [0], [0], [1], [0, 0, 1, 1], [], []>} : vector<8x8xf32>, vector<8x32xf32>, vector<8x32xf32> -> vector<8x32xf32>
    %c0_20 = arith.constant 0 : index
    %c0_21 = arith.constant 0 : index
    %23 = vector.load %arg10[%c0_20, %c0_21] : memref<1x32xf32, #tpu.memory_space<vmem>>, vector<1x32xf32>
    %24 = vector.broadcast %23 : vector<1x32xf32> to vector<8x32xf32>
    %25 = arith.addf %22, %24 : vector<8x32xf32>
    %26 = math.tanh %25 : vector<8x32xf32>
    %c0_22 = arith.constant 0 : index
    %c0_23 = arith.constant 0 : index
    %27 = vector.load %arg11[%c0_22, %c0_23] : memref<32x4xf32, #tpu.memory_space<vmem>>, vector<32x4xf32>
    %cst_24 = arith.constant dense<0.000000e+00> : vector<8x4xf32>
    %28 = tpu.matmul %26, %27, %cst_24 {dimension_numbers = #tpu.dot_dimension_numbers<[1], [0], [0], [1], [0, 0, 1, 1], [], []>} : vector<8x32xf32>, vector<32x4xf32>, vector<8x4xf32> -> vector<8x4xf32>
    %c0_25 = arith.constant 0 : index
    %c0_26 = arith.constant 0 : index
    %29 = vector.load %arg12[%c0_25, %c0_26] : memref<1x4xf32, #tpu.memory_space<vmem>>, vector<1x4xf32>
    %30 = vector.broadcast %29 : vector<1x4xf32> to vector<8x4xf32>
    %31 = arith.addf %28, %30 : vector<8x4xf32>
    %c0_27 = arith.constant 0 : index
    %c0_28 = arith.constant 0 : index
    %32 = vector.load %arg13[%c0_27, %c0_28] : memref<8x4xf32, #tpu.memory_space<vmem>>, vector<8x4xf32>
    tpu.vector_store %arg13[%c0_27, %c0_28], %31 {strides = array<i32>} : memref<8x4xf32, #tpu.memory_space<vmem>>, vector<8x4xf32>,
    %c0_29 = arith.constant 0 : index
    %c0_30 = arith.constant 0 : index
    %33 = vector.load %arg14[%c0_29, %c0_30] : memref<8x8xf32, #tpu.memory_space<vmem>>, vector<8x8xf32>
    tpu.vector_store %arg14[%c0_29, %c0_30], %11 {strides = array<i32>} : memref<8x8xf32, #tpu.memory_space<vmem>>, vector<8x8xf32>,
    %c0_31 = arith.constant 0 : index
    %c0_32 = arith.constant 0 : index
    %34 = vector.load %arg15[%c0_31, %c0_32] : memref<8x8xf32, #tpu.memory_space<vmem>>, vector<8x8xf32>
    tpu.vector_store %arg15[%c0_31, %c0_32], %17 {strides = array<i32>} : memref<8x8xf32, #tpu.memory_space<vmem>>, vector<8x8xf32>,
    %c0_33 = arith.constant 0 : index
    %c0_34 = arith.constant 0 : index
    %35 = vector.load %arg16[%c0_33, %c0_34] : memref<8x8xf32, #tpu.memory_space<vmem>>, vector<8x8xf32>
    tpu.vector_store %arg16[%c0_33, %c0_34], %20 {strides = array<i32>} : memref<8x8xf32, #tpu.memory_space<vmem>>, vector<8x8xf32>,
    return
  }
  func.func @transform_0(%arg0: i32) -> (i32, i32) {
    %c0_i32 = arith.constant 0 : i32
    %c0_i32_0 = arith.constant 0 : i32
    return %arg0, %c0_i32 : i32, i32
  }
  func.func @transform_1(%arg0: i32) -> (i32, i32) {
    %c0_i32 = arith.constant 0 : i32
    %c0_i32_0 = arith.constant 0 : i32
    return %arg0, %c0_i32 : i32, i32
  }
  func.func @transform_2(%arg0: i32) -> (i32, i32) {
    %c0_i32 = arith.constant 0 : i32
    %c0_i32_0 = arith.constant 0 : i32
    %c0_i32_1 = arith.constant 0 : i32
    return %c0_i32, %c0_i32_0 : i32, i32
  }
  func.func @transform_3(%arg0: i32) -> (i32, i32) {
    %c0_i32 = arith.constant 0 : i32
    %c0_i32_0 = arith.constant 0 : i32
    %c0_i32_1 = arith.constant 0 : i32
    return %c0_i32, %c0_i32_0 : i32, i32
  }
  func.func @transform_4(%arg0: i32) -> (i32, i32) {
    %c0_i32 = arith.constant 0 : i32
    %c0_i32_0 = arith.constant 0 : i32
    %c0_i32_1 = arith.constant 0 : i32
    return %c0_i32, %c0_i32_0 : i32, i32
  }
  func.func @transform_5(%arg0: i32) -> (i32, i32) {
    %c0_i32 = arith.constant 0 : i32
    %c0_i32_0 = arith.constant 0 : i32
    %c0_i32_1 = arith.constant 0 : i32
    return %c0_i32, %c0_i32_0 : i32, i32
  }
  func.func @transform_6(%arg0: i32) -> (i32, i32) {
    %c0_i32 = arith.constant 0 : i32
    %c0_i32_0 = arith.constant 0 : i32
    %c0_i32_1 = arith.constant 0 : i32
    return %c0_i32, %c0_i32_0 : i32, i32
  }
  func.func @transform_7(%arg0: i32) -> (i32, i32) {
    %c0_i32 = arith.constant 0 : i32
    %c0_i32_0 = arith.constant 0 : i32
    %c0_i32_1 = arith.constant 0 : i32
    return %c0_i32, %c0_i32_0 : i32, i32
  }
  func.func @transform_8(%arg0: i32) -> (i32, i32) {
    %c0_i32 = arith.constant 0 : i32
    %c0_i32_0 = arith.constant 0 : i32
    %c0_i32_1 = arith.constant 0 : i32
    return %c0_i32, %c0_i32_0 : i32, i32
  }
  func.func @transform_9(%arg0: i32) -> (i32, i32) {
    %c0_i32 = arith.constant 0 : i32
    %c0_i32_0 = arith.constant 0 : i32
    %c0_i32_1 = arith.constant 0 : i32
    return %c0_i32, %c0_i32_0 : i32, i32
  }
  func.func @transform_10(%arg0: i32) -> (i32, i32) {
    %c0_i32 = arith.constant 0 : i32
    %c0_i32_0 = arith.constant 0 : i32
    %c0_i32_1 = arith.constant 0 : i32
    return %c0_i32, %c0_i32_0 : i32, i32
  }
  func.func @transform_11(%arg0: i32) -> (i32, i32) {
    %c0_i32 = arith.constant 0 : i32
    %c0_i32_0 = arith.constant 0 : i32
    %c0_i32_1 = arith.constant 0 : i32
    return %c0_i32, %c0_i32_0 : i32, i32
  }
  func.func @transform_12(%arg0: i32) -> (i32, i32) {
    %c0_i32 = arith.constant 0 : i32
    %c0_i32_0 = arith.constant 0 : i32
    return %arg0, %c0_i32 : i32, i32
  }
  func.func @transform_13(%arg0: i32) -> (i32, i32) {
    %c0_i32 = arith.constant 0 : i32
    %c0_i32_0 = arith.constant 0 : i32
    return %arg0, %c0_i32 : i32, i32
  }
  func.func @transform_14(%arg0: i32) -> (i32, i32) {
    %c0_i32 = arith.constant 0 : i32
    %c0_i32_0 = arith.constant 0 : i32
    return %arg0, %c0_i32 : i32, i32
  }
  func.func @transform_15(%arg0: i32) -> (i32, i32) {
    %c0_i32 = arith.constant 0 : i32
    %c0_i32_0 = arith.constant 0 : i32
    return %arg0, %c0_i32 : i32, i32
  }
}

</mosaic_0001>

<bundles_post_ra>
// kernel: _lambda_.1
= control target key start
LH: loop header
LB: loop body
LE: loop exit
PB: predicated region body
PF: predicated region fallthrough
CT: control target
= control target key end

     0   :  { %vm58_vm0 = vcmask 1043456   ;;  %vm54_vm1 = vcmask 31744   ;;  %v591_v0 = vmov 0.0   ;;  %vm592_vm2 = vmmov 0   ;;  %s769_s2 = inlined_call_operand.vmem [shape: f32[4,32], index: 2, kind: input, shape index: {}]   ;;  %s770_s0 = inlined_call_operand.vmem [shape: f32[8,4], index: 0, kind: input, shape index: {}]   ;;  %s771_s4 = inlined_call_operand.vmem [shape: f32[32,8], index: 4, kind: input, shape index: {}]   ;;  %s772_s6 = inlined_call_operand.vmem [shape: f32[32,8], index: 6, kind: input, shape index: {}]   ;;  %s773_s3 = inlined_call_operand.vmem [shape: f32[1,32], index: 3, kind: input, shape index: {}]   ;;  %s774_s8 = inlined_call_operand.vmem [shape: f32[8,32], index: 8, kind: input, shape index: {}]   ;;  %s775_s5 = inlined_call_operand.vmem [shape: f32[1,8], index: 5, kind: input, shape index: {}]   ;;  %s776_s7 = inlined_call_operand.vmem [shape: f32[1,8], index: 7, kind: input, shape index: {}]   ;;  %s777_s13 = inlined_call_operand.vmem [shape: f32[8,8], index: 13, kind: output, shape index: {1}]   ;;  %s778_s1 = inlined_call_operand.vmem [shape: f32[8,8], index: 1, kind: input, shape index: {}]   ;;  %s779_s14 = inlined_call_operand.vmem [shape: f32[8,8], index: 14, kind: output, shape index: {2}]   ;;  %s780_s15 = inlined_call_operand.vmem [shape: f32[8,8], index: 15, kind: output, shape index: {3}]   ;;  %s781_s10 = inlined_call_operand.vmem [shape: f32[32,4], index: 10, kind: input, shape index: {}]   ;;  %s782_s9 = inlined_call_operand.vmem [shape: f32[1,32], index: 9, kind: input, shape index: {}]   ;;  %s783_s11 = inlined_call_operand.vmem [shape: f32[1,4], index: 11, kind: input, shape index: {}]   ;;  %s784_s12 = inlined_call_operand.vmem [shape: f32[8,4], index: 12, kind: output, shape index: {0}]  }
   0x1   :  { %521 = vmatprep.subr.mxu1 %v591_v0  ;;  %v46_v1 = vld [vmem:[%s769_s2] sm:$0xf]  ;;  %523 = vmatprep.mubr.msk.f32.mxu1 %vm592_vm2, %v591_v0  ;;  %v593_v3 = vmov 0.0|0.0   ;;  %v134_v5 = vld [vmem:[%s771_s4 + $0x8] sm:$0xff]  ;;  %v135_v9 = vld [vmem:[%s771_s4 + $0x10] sm:$0xff]  ;;  %vm144_vm3 = vcmask 261120  }
   0x2   :  { %v45_v2 = vld [vmem:[%s770_s0] sm:$0xff]  ;;  %522 = vmatpush3.msk.msra.mxu1 %vm58_vm0, %v46_v1  ;;  %545 = vmatprep.mubr.msk.f32.mxu0 %vm592_vm2, %v591_v0  ;;  %v219_v8 = vld [vmem:[%s772_s6 + $0x8] sm:$0xff]  ;;  %v136_v10 = vld [vmem:[%s771_s4 + $0x18] sm:$0xff]  ;;  %vm312_vm4 = vcmask 64512  }
   0x3   :  { %524 = vmatmul.mubr.msk.f32.vlgmr.msra.gmra.mrb[0].mxu1 %vm54_vm1, %v45_v2  ;;  %564 = vmatprep.subr.bf16.mxu1 %v593_v3  ;;  %v133_v4 = vld [vmem:[%s771_s4] sm:$0xff]  ;;  %v220_v12 = vld [vmem:[%s772_s6 + $0x10] sm:$0xff]  ;;  %v221_v13 = vld [vmem:[%s772_s6 + $0x18] sm:$0xff]  ;;  %v568_v14 = vpack.c.bf16 %v136_v10, %v135_v9 }
   0x4   :  { %534 = vmatprep.mubr.msk.f32.mxu1 %vm592_vm2, %v591_v0  ;;  %570 = vmatprep.subr.bf16.mxu0 %v593_v3  ;;  %v218_v6 = vld [vmem:[%s772_s6] sm:$0xff]  ;;  %v565_v7 = vpack.c.bf16 %v134_v5, %v133_v4  ;;  %v574_v15 = vpack.c.bf16 %v221_v13, %v220_v12  ;;  %v388_v36 = vld [vmem:[%s781_s10 + $0x8] sm:$0xff]  ;;  %v389_v37 = vld [vmem:[%s781_s10 + $0x10] sm:$0xff] }
   0x5   :  { %v571_v11 = vpack.c.bf16 %v219_v8, %v218_v6  ;;  %v491_v16 = vld [vmem:[%s773_s3] ss:$0 sm:$0xff]  ;;  %v390_v39 = vld [vmem:[%s781_s10 + $0x18] sm:$0xff] }
   0x6   :  { %566 = vmatpush3.bf16.msra.mxu1 %v565_v7  ;;  %v304_v21 = vld [vmem:[%s774_s8] sm:$0xff]  ;;  %v580_v40 = vpack.c.bf16 %v390_v39, %v389_v37 }
   0x7   :  { %572 = vmatpush3.bf16.msra.mxu0 %v571_v11  ;;  %567 = vmatprep.subr.bf16.mxu1 %v593_v3  ;;  %v494_v22 = vld [vmem:[%s775_s5] ss:$0 sm:$0xff] }
   0x8   :  { %573 = vmatprep.subr.bf16.mxu0 %v593_v3  ;;  %v496_v23 = vld [vmem:[%s776_s7] ss:$0 sm:$0xff] }
   0x9   :  { %v301_v31 = vld [vmem:[%s778_s1] sm:$0xff] }
   0xa   :  { %569 = vmatpush3.bf16.msra.mxu1 %v568_v14  ;;  %v387_v35 = vld [vmem:[%s781_s10] sm:$0xff] }
   0xb   :  { %575 = vmatpush3.bf16.msra.mxu0 %v574_v15  ;;  %548 = vmatprep.subr.mxu1 %v591_v0  ;;  %v577_v38 = vpack.c.bf16 %v388_v36, %v387_v35  ;;  %v498_v41 = vld [vmem:[%s782_s9] ss:$0 sm:$0xff] }
   0xc   :  { %576 = vmatprep.subr.bf16.mxu0 %v593_v3  ;;  %v500_v46 = vld [vmem:[%s783_s11] ss:$0 sm:$0xff] }
  0xd6   :  { %v128_v17 = vpop.f32.mrb[0].mxu1 }
  0xd7   :  { %v129_v18 = vadd.f32 %v491_v16, %v128_v17  ;;  %v525_v19 = vpop.f32.mrb[1].mxu1 }
  0xd9   :  { %585 = vtanh.f32 %v129_v18 }
  0xe3   :  { %v586_v20 = vpop.eup %585 }
  0xe4   :  { %535 = vmatmul.mubr.msk.f32.vlgmr.msra.gmra.mrb[2].mxu1 %vm144_vm3, %v586_v20  ;;  %546 = vmatmul.mubr.msk.f32.vlgmr.msra.gmra.mrb[0].mxu0 %vm144_vm3, %v586_v20 }
  0xe5   :  { %550 = vmatprep.mubr.msk.f32.mxu1 %vm592_vm2, %v591_v0  ;;  %561 = vmatprep.mubr.msk.f32.mxu0 %vm592_vm2, %v591_v0 }
  0xe6   :  { %549 = vmatpush3.msra.mxu1 %v304_v21  ;;  %578 = vmatpush3.bf16.msra.mxu0 %v577_v38 }
  0xe7   :  { %579 = vmatprep.subr.bf16.mxu0 %v593_v3 }
  0xea   :  { %581 = vmatpush3.bf16.msra.mxu0 %v580_v40 }
 0x1b7   :  { %v214_v24 = vpop.f32.mrb[2].mxu1  ;;  %v295_v25 = vpop.f32.mrb[0].mxu0 }
 0x1b8   :  { %v215_v26 = vadd.f32 %v494_v22, %v214_v24  ;;  %v296_v27 = vadd.f32 %v496_v23, %v295_v25  ;;  %v536_v28 = vpop.f32.mrb[3].mxu1  ;;  %v547_v29 = vpop.f32.mrb[1].mxu0 }
 0x1ba   :  { %472 = vst.msk [vmem:[%s777_s13] sm:$0xff] %vm312_vm4, %v215_v26  ;;  %v299_v30 = vmul.f32 1.442695, %v296_v27 }
 0x1bc   :  { %587 = vpow2.f32 %v299_v30 }
 0x1c6   :  { %v588_v32 = vpop.eup %587 }
 0x1c7   :  { %v302_v33 = vmul.f32 %v588_v32, %v301_v31  ;;  %473 = vst.msk [vmem:[%s779_s14] sm:$0xff] %vm312_vm4, %v588_v32 }
 0x1c9   :  { %v303_v34 = vadd.f32 %v302_v33, %v215_v26 }
 0x1cb   :  { %551 = vmatmul.mubr.msk.f32.vlgmr.msra.gmra.mrb[4].mxu1 %vm312_vm4, %v303_v34  ;;  %474 = vst.msk [vmem:[%s780_s15] sm:$0xff] %vm312_vm4, %v303_v34 }
 0x29e   :  { %v382_v42 = vpop.f32.mrb[4].mxu1 }
 0x29f   :  { %v383_v43 = vadd.f32 %v498_v41, %v382_v42  ;;  %v552_v44 = vpop.f32.mrb[5].mxu1 }
 0x2a1   :  { %589 = vtanh.f32 %v383_v43 }
 0x2ab   :  { %v590_v45 = vpop.eup %589 }
 0x2ac   :  { %562 = vmatmul.mubr.msk.f32.vlgmr.msra.gmra.mrb[2].mxu0 %vm144_vm3, %v590_v45 }
 0x37f   :  { %v467_v47 = vpop.f32.mrb[2].mxu0 }
 0x380   :  { %v468_v48 = vadd.f32 %v500_v46, %v467_v47  ;;  %v563_v49 = vpop.f32.mrb[3].mxu0 }
 0x382   :  { %471 = vst.msk [vmem:[%s784_s12] sm:$0xff] %vm54_vm1, %v468_v48 }

</bundles_post_ra>
